<compile_context>
chip_gen: v7x
topology: tpu7x:2x2x1
jax: 0.10.0
libtpu: 0.0.40
codegen_flags: <defaults>
</compile_context>

<pallas_src>
import jax
import jax.numpy as jnp
from jax.experimental import pallas as pl
from jax.experimental.pallas import tpu as pltpu


def _round_up(x, m):
    return ((x + m - 1) // m) * m


def _scorer_kernel(x_ref, wpt_ref, bp_ref, wet_ref, o_ref, proj_ref):
    # x_ref   : (tm, H)   row tile of the flattened input
    # wpt_ref : (H, E)    projector weight, pre-transposed (resident)
    # bp_ref  : (1, E)    projector bias (resident)
    # wet_ref : (E, tv)   tied-embedding weight slice, pre-transposed (streamed)
    # o_ref   : (tm, tv)  output logits tile
    # proj_ref: (tm, E)   f32 scratch caching projected rows across vocab tiles

    # Projector matmul + bias only once per row tile: the vocab axis is the
    # inner ("arbitrary") grid axis, so program_id(1) == 0 is its first step.
    @pl.when(pl.program_id(1) == 0)
    def _():
        proj = jnp.dot(x_ref[...], wpt_ref[...],
                       preferred_element_type=jnp.float32)
        proj_ref[...] = proj + bp_ref[...].astype(jnp.float32)

    # Tied-embedding scoring against this vocab slice: (tm, E) @ (E, tv).
    scores = jnp.dot(proj_ref[...].astype(wet_ref.dtype), wet_ref[...],
                     preferred_element_type=jnp.float32)
    o_ref[...] = scores.astype(o_ref.dtype)


def tied_embedding_scorer(inp, wp, bp, we, *, tm=256, tv=2048,
                          compute_dtype=None):
    """TiedEmbeddingScorer forward.

    inp: (B, S, H) hidden states
    wp : (E, H)    projector weight (PyTorch nn.Linear layout: out x in)
    bp : (E,)      projector bias
    we : (V, E)    tied embedding weight
    ->   (B, S, V) logits

    tm / tv are the row / vocab tile sizes (clamped to the problem size).
    compute_dtype: optionally cast x and weights (e.g. jnp.bfloat16) to use
    the fast narrow MXU path; accumulation stays f32 either way.
    """
    B, S, H = inp.shape
    E, H2 = wp.shape
    assert H == H2
    V, E2 = we.shape
    assert E == E2

    out_dtype = inp.dtype
    M = B * S

    # One-time, wrapper-side layout work (outside the kernel, not per tile).
    x2d = inp.reshape(M, H)
    wpt = wp.T            # (H, E)
    wet = we.T            # (E, V)
    bp2d = bp.reshape(1, E)
    if compute_dtype is not None:
        x2d = x2d.astype(compute_dtype)
        wpt = wpt.astype(compute_dtype)
        wet = wet.astype(compute_dtype)

    # Tile sizes: big enough to amortize per-grid-step overhead and keep the
    # MXU fed, clamped/aligned to satisfy the (8, 128) block rule.
    tm_eff = min(tm, _round_up(M, 8))
    tv_eff = min(tv, _round_up(V, 128))

    n_m = pl.cdiv(M, tm_eff)
    n_v = pl.cdiv(V, tv_eff)

    itemsize = jnp.dtype(x2d.dtype).itemsize
    out_itemsize = jnp.dtype(out_dtype).itemsize
    # Rough VMEM footprint (Pallas double-buffers inputs/outputs) + scratch.
    est_vmem = (2 * itemsize * (tm_eff * H + H * E + E + E * tv_eff)
                + 2 * out_itemsize * tm_eff * tv_eff
                + 4 * tm_eff * E)
    # Keep headroom but stay under the per-TC budget of every generation
    # (v7x has only 64 MiB VMEM per TensorCore).
    vmem_limit = int(min(max(2 * est_vmem, 32 * 1024 * 1024),
                         56 * 1024 * 1024))

    flops = 2 * M * H * E + 2 * M * E * V
    bytes_accessed = (x2d.size * itemsize
                      + wpt.size * itemsize
                      + bp2d.size * jnp.dtype(bp2d.dtype).itemsize
                      + n_m * wet.size * itemsize       # We streamed per row tile
                      + M * V * out_itemsize)

    out = pl.pallas_call(
        _scorer_kernel,
        out_shape=jax.ShapeDtypeStruct((M, V), out_dtype),
        grid_spec=pltpu.PrefetchScalarGridSpec(
            num_scalar_prefetch=0,
            grid=(n_m, n_v),
            in_specs=[
                # Row tile of the input; constant across the vocab axis so it
                # is only fetched once per row tile.
                pl.BlockSpec((tm_eff, H), lambda i, j: (i, 0)),
                # Projector weight / bias stay fully resident (constant index).
                pl.BlockSpec((H, E), lambda i, j: (0, 0)),
                pl.BlockSpec((1, E), lambda i, j: (0, 0)),
                # Embedding weight streamed one vocab slice at a time so real
                # vocabularies never have to fit in VMEM.
                pl.BlockSpec((E, tv_eff), lambda i, j: (0, j)),
            ],
            out_specs=pl.BlockSpec((tm_eff, tv_eff), lambda i, j: (i, j)),
            scratch_shapes=[pltpu.VMEM((tm_eff, E), jnp.float32)],
        ),
        compiler_params=pltpu.CompilerParams(
            # Row tiles are independent (megacore may split them); the vocab
            # axis must stay sequential because the proj scratch is reused.
            dimension_semantics=("parallel", "arbitrary"),
            vmem_limit_bytes=vmem_limit,
        ),
        cost_estimate=pl.CostEstimate(
            flops=flops, transcendentals=0, bytes_accessed=bytes_accessed),
    )(x2d, wpt, bp2d, wet)

    return out.reshape(B, S, V)


def _reference(inp, wp, bp, we):
    proj = jnp.einsum("bsh,eh->bse", inp, wp) + bp
    return jnp.einsum("bse,ve->bsv", proj, we)


if __name__ == "__main__":
    # Small, module-consistent shapes: batch=2, seq=8, hidden=32, embed=32, vocab=128.
    B, S, H, E, V = 2, 8, 32, 32, 128

    key = jax.random.PRNGKey(0)
    k_x, k_wp, k_bp, k_we = jax.random.split(key, 4)

    inp = jax.random.normal(k_x, (B, S, H), dtype=jnp.float32)
    wp = jax.random.normal(k_wp, (E, H), dtype=jnp.float32) * (1.0 / jnp.sqrt(H))
    bp = jax.random.normal(k_bp, (E,), dtype=jnp.float32) * 0.1
    we = jax.random.normal(k_we, (V, E), dtype=jnp.float32) * (1.0 / jnp.sqrt(E))

    out = tied_embedding_scorer(inp, wp, bp, we)
    out = jax.block_until_ready(out)

    ref = _reference(inp, wp, bp, we)
    assert out.shape == (B, S, V)
    assert jnp.allclose(out, ref, atol=1e-3, rtol=1e-3), "mismatch vs reference"

    print("KERNEL_OK")
</pallas_src>

<mosaic_0001>
module attributes {stable_mosaic.version = 11 : i64} {
  func.func @_scorer_kernel(%arg0: i32, %arg1: i32, %arg2: memref<16x32xf32, #tpu.memory_space<vmem>>, %arg3: memref<32x32xf32, #tpu.memory_space<vmem>>, %arg4: memref<1x32xf32, #tpu.memory_space<vmem>>, %arg5: memref<32x128xf32, #tpu.memory_space<vmem>>, %arg6: memref<16x128xf32, #tpu.memory_space<vmem>>, %arg7: memref<16x32xf32, #tpu.memory_space<vmem>>) attributes {dimension_semantics = [#tpu.dimension_semantics<parallel>, #tpu.dimension_semantics<arbitrary>], iteration_bounds = array<i64: 1, 1>, scalar_prefetch = 0 : i64, scratch_operands = 1 : i64, tpu.core_type = #tpu.core_type<tc>, window_params = [{transform_indices = @transform_0, window_bounds = array<i64: 16, 32>}, {pipeline_mode = #tpu.pipeline_mode<synchronous>, transform_indices = @transform_1, window_bounds = array<i64: 32, 32>}, {pipeline_mode = #tpu.pipeline_mode<synchronous>, transform_indices = @transform_2, window_bounds = array<i64: 1, 32>}, {transform_indices = @transform_3, window_bounds = array<i64: 32, 128>}, {transform_indices = @transform_4, window_bounds = array<i64: 16, 128>}]} {
    %c0_i32 = arith.constant 0 : i32
    %0 = arith.cmpi eq, %arg1, %c0_i32 : i32
    %1 = arith.extui %0 : i1 to i32
    %c0_i32_0 = arith.constant 0 : i32
    %2 = arith.cmpi ne, %1, %c0_i32_0 : i32
    scf.if %2 {
      %c0_6 = arith.constant 0 : index
      %c0_7 = arith.constant 0 : index
      %7 = vector.load %arg2[%c0_6, %c0_7] : memref<16x32xf32, #tpu.memory_space<vmem>>, vector<16x32xf32>
      %c0_8 = arith.constant 0 : index
      %c0_9 = arith.constant 0 : index
      %8 = vector.load %arg3[%c0_8, %c0_9] : memref<32x32xf32, #tpu.memory_space<vmem>>, vector<32x32xf32>
      %cst_10 = arith.constant dense<0.000000e+00> : vector<16x32xf32>
      %9 = tpu.matmul %7, %8, %cst_10 {dimension_numbers = #tpu.dot_dimension_numbers<[1], [0], [0], [1], [0, 0, 1, 1], [], []>} : vector<16x32xf32>, vector<32x32xf32>, vector<16x32xf32> -> vector<16x32xf32>
      %c0_11 = arith.constant 0 : index
      %c0_12 = arith.constant 0 : index
      %10 = vector.load %arg4[%c0_11, %c0_12] : memref<1x32xf32, #tpu.memory_space<vmem>>, vector<1x32xf32>
      %11 = vector.broadcast %10 : vector<1x32xf32> to vector<16x32xf32>
      %12 = arith.addf %9, %11 : vector<16x32xf32>
      %c0_13 = arith.constant 0 : index
      %c0_14 = arith.constant 0 : index
      %13 = vector.load %arg7[%c0_13, %c0_14] : memref<16x32xf32, #tpu.memory_space<vmem>>, vector<16x32xf32>
      tpu.vector_store %arg7[%c0_13, %c0_14], %12 {strides = array<i32>} : memref<16x32xf32, #tpu.memory_space<vmem>>, vector<16x32xf32>,
    } else {
    }
    %c0 = arith.constant 0 : index
    %c0_1 = arith.constant 0 : index
    %3 = vector.load %arg7[%c0, %c0_1] : memref<16x32xf32, #tpu.memory_space<vmem>>, vector<16x32xf32>
    %c0_2 = arith.constant 0 : index
    %c0_3 = arith.constant 0 : index
    %4 = vector.load %arg5[%c0_2, %c0_3] : memref<32x128xf32, #tpu.memory_space<vmem>>, vector<32x128xf32>
    %cst = arith.constant dense<0.000000e+00> : vector<16x128xf32>
    %5 = tpu.matmul %3, %4, %cst {dimension_numbers = #tpu.dot_dimension_numbers<[1], [0], [0], [1], [0, 0, 1, 1], [], []>} : vector<16x32xf32>, vector<32x128xf32>, vector<16x128xf32> -> vector<16x128xf32>
    %c0_4 = arith.constant 0 : index
    %c0_5 = arith.constant 0 : index
    %6 = vector.load %arg6[%c0_4, %c0_5] : memref<16x128xf32, #tpu.memory_space<vmem>>, vector<16x128xf32>
    tpu.vector_store %arg6[%c0_4, %c0_5], %5 {strides = array<i32>} : memref<16x128xf32, #tpu.memory_space<vmem>>, vector<16x128xf32>,
    return
  }
  func.func @transform_0(%arg0: i32, %arg1: i32) -> (i32, i32) {
    %c0_i32 = arith.constant 0 : i32
    %c0_i32_0 = arith.constant 0 : i32
    return %arg0, %c0_i32 : i32, i32
  }
  func.func @transform_1(%arg0: i32, %arg1: i32) -> (i32, i32) {
    %c0_i32 = arith.constant 0 : i32
    %c0_i32_0 = arith.constant 0 : i32
    %c0_i32_1 = arith.constant 0 : i32
    return %c0_i32, %c0_i32_0 : i32, i32
  }
  func.func @transform_2(%arg0: i32, %arg1: i32) -> (i32, i32) {
    %c0_i32 = arith.constant 0 : i32
    %c0_i32_0 = arith.constant 0 : i32
    %c0_i32_1 = arith.constant 0 : i32
    return %c0_i32, %c0_i32_0 : i32, i32
  }
  func.func @transform_3(%arg0: i32, %arg1: i32) -> (i32, i32) {
    %c0_i32 = arith.constant 0 : i32
    %c0_i32_0 = arith.constant 0 : i32
    return %c0_i32, %arg1 : i32, i32
  }
  func.func @transform_4(%arg0: i32, %arg1: i32) -> (i32, i32) {
    %c0_i32 = arith.constant 0 : i32
    return %arg0, %arg1 : i32, i32
  }
}

</mosaic_0001>

<bundles_post_ra>
// kernel: tpu_custom_call.1
= control target key start
LH: loop header
LB: loop body
LE: loop exit
PB: predicated region body
PF: predicated region fallthrough
CT: control target
= control target key end

     0   :  { %9 = vsyncpa [#allocation4], 0  ;;  %s530_s0 = inlined_call_operand.hbm [shape: f32[16,32], index: 0, kind: input, shape index: {}]   ;;  %s531_s1 = inlined_call_operand.hbm [shape: f32[32,32], index: 1, kind: input, shape index: {}]   ;;  %s532_s2 = inlined_call_operand.vmem [shape: f32[1,32], index: 2, kind: input, shape index: {}]   ;;  %s533_s3 = inlined_call_operand.hbm [shape: f32[32,128], index: 3, kind: input, shape index: {}]   ;;  %s534_s4 = inlined_call_operand.hbm [shape: f32[16,128], index: 4, kind: output, shape index: {}]  }
   0x1   :  { %10 = vsyncpa [#allocation7], 0 }
   0x2   :  { %11 = vsyncpa [#allocation5], 0  ;;  %s423_s15 = smov [#allocation6]   ;;  %s424_s17 = smov [#allocation3]  }
   0x3   :  { %s29_s16 = sshll.u32 %s423_s15, 4  ;;  %s17_s18 = sshll.u32 %s424_s17, 4  ;;  %s30_s16 = int_to_ptr.vmem [resolvable:$true] %s29_s16  ;;  %s454_s18 = int_to_ptr.vmem [resolvable:$true] %s17_s18 }
   0x4   :  { %s329_s21 = scalar_lea.hbm %s531_s1, 512 }
   0x5   :  { %p330_p0 = scmp.ne.s32.totalorder %s531_s1, %s329_s21  ;;  %p333_p1 = scmp.lt.u32.totalorder %s329_s21, %s531_s1 }
   0x7   :  { %p335_p2 = pnand %p333_p1, %p330_p0 }
   0x9   :  { %338 = shalt.err (!%p335_p2)
}
   0xa   :  { %s339_s26 = scalar_lea.vmem %s30_s16, 512  ;;  %p344_p4 = scmp.lt.s32.totalorder %s30_s16, %s30_s16 }
   0xb   :  { %p340_p3 = scmp.ne.s32.totalorder %s30_s16, %s339_s26  ;;  %p345_p5 = scmp.lt.s32.totalorder %s339_s26, %s339_s26 }
   0xd   :  { %p346_p6 = por %p345_p5, %p344_p4 }
   0xf   :  { %p347_p7 = pnand %p346_p6, %p340_p3 }
  0x11   :  { %350 = shalt.err (!%p347_p7)
}
  0x12   :  { %s425_s27 = smov 128   ;;  %s426_s28 = smov 8  }
  0x13   :  { %35 = dma.hbm_to_vmem [thread:$0]  %s531_s1, 512, %s30_s16, [#allocation7], %s425_s27, %s425_s27, %s426_s28  }
  0x14   :  { %s351_s7 = scalar_lea.hbm %s530_s0, 256 }
  0x15   :  { %p352_p8 = scmp.ne.s32.totalorder %s530_s0, %s351_s7  ;;  %p355_p9 = scmp.lt.u32.totalorder %s351_s7, %s530_s0 }
  0x17   :  { %p357_p10 = pnand %p355_p9, %p352_p8 }
  0x19   :  { %360 = shalt.err (!%p357_p10)
}
  0x1a   :  { %s361_s12 = scalar_lea.vmem %s454_s18, 256  ;;  %p366_p12 = scmp.lt.s32.totalorder %s454_s18, %s454_s18 }
  0x1b   :  { %p362_p11 = scmp.ne.s32.totalorder %s454_s18, %s361_s12  ;;  %p367_p13 = scmp.lt.s32.totalorder %s361_s12, %s361_s12 }
  0x1d   :  { %p368_p0 = por %p367_p13, %p366_p12 }
  0x1f   :  { %p369_p1 = pnand %p368_p0, %p362_p11 }
  0x21   :  { %372 = shalt.err (!%p369_p1)
}
  0x22   :  { %23 = dma.hbm_to_vmem [thread:$0]  %s530_s0, 256, %s454_s18, [#allocation4], %s425_s27, %s425_s27, %s426_s28  }
  0x23   :  { %s427_s14 = smov [#allocation8]   ;;  %s373_s19 = scalar_lea.hbm %s533_s3, 512 }
  0x24   :  { %s43_s15 = sshll.u32 %s427_s14, 4  ;;  %p374_p2 = scmp.ne.s32.totalorder %s533_s3, %s373_s19  ;;  %s44_s15 = int_to_ptr.vmem [resolvable:$true] %s43_s15 }
  0x25   :  { %p377_p3 = scmp.lt.u32.totalorder %s373_s19, %s533_s3 }
  0x27   :  { %p379_p4 = pnand %p377_p3, %p374_p2 }
  0x29   :  { %382 = shalt.err (!%p379_p4)
}
  0x2a   :  { %s383_s24 = scalar_lea.vmem %s44_s15, 512  ;;  %p388_p6 = scmp.lt.s32.totalorder %s44_s15, %s44_s15 }
  0x2b   :  { %p384_p5 = scmp.ne.s32.totalorder %s44_s15, %s383_s24  ;;  %p389_p7 = scmp.lt.s32.totalorder %s383_s24, %s383_s24 }
  0x2d   :  { %p390_p8 = por %p389_p7, %p388_p6 }
  0x2f   :  { %p391_p9 = pnand %p390_p8, %p384_p5 }
  0x31   :  { %394 = shalt.err (!%p391_p9)
}
  0x32   :  { %49 = dma.hbm_to_vmem [thread:$0]  %s533_s3, 512, %s44_s15, [#allocation7], %s425_s27, %s425_s27, %s426_s28  }
  0x33   :  { %417 = dma.done.wait [#allocation4], 256  }
  0x34   :  { %418 = vsyncadd [#allocation4], 4294967040 }
  0x35   :  { %419 = dma.done.wait [#allocation7], 1024  }
  0x36   :  { %420 = vsyncadd [#allocation7], 4294966272  ;;  %vm76_vm0 = vcmask 261120   ;;  %v65_v0 = vld [vmem:[#allocation6] sm:$0xff]  ;;  %v66_v1 = vld [vmem:[#allocation6 + $0x8] sm:$0xff]  ;;  %s428_s26 = smov [#allocation9]  }
  0x37   :  { %v67_v2 = vld [vmem:[#allocation6 + $0x10] sm:$0xff]  ;;  %v307_v3 = vpack.c.bf16 %v66_v1, %v65_v0  ;;  %v68_v4 = vld [vmem:[#allocation6 + $0x18] sm:$0xff]  ;;  %v162_v8 = vld [vmem:[#allocation8] sm:$0xff]  ;;  %s255_s29 = sshll.u32 %s428_s26, 4  ;;  %s256_s29 = int_to_ptr.vmem [resolvable:$true] %s255_s29 }
  0x38   :  { %v63_v5 = vld [vmem:[#allocation3] sm:$0xff]  ;;  %v311_v6 = vpack.c.bf16 %v68_v4, %v67_v2  ;;  %v64_v7 = vld [vmem:[#allocation3 + $0x8] sm:$0xff]  ;;  %v163_v9 = vld [vmem:[#allocation8 + $0x8] sm:$0xff]  ;;  %p400_p11 = scmp.lt.s32.totalorder %s256_s29, %s256_s29 }
  0x39   :  { %293 = vmatprep.mubr.msk.f32.mxu0 %vm76_vm0, %v63_v5  ;;  %308 = vmatprep.subr.bf16.mxu0 %v307_v3  ;;  %v315_v10 = vpack.c.bf16 %v163_v9, %v162_v8  ;;  %v164_v11 = vld [vmem:[#allocation8 + $0x10] sm:$0xff]  ;;  %v165_v12 = vld [vmem:[#allocation8 + $0x18] sm:$0xff]  ;;  %v268_v14 = vld [vmem:[%s532_s2] ss:$0 sm:$0xff]  ;;  %s395_s2 = scalar_lea.vmem %s256_s29, 256 }
  0x3a   :  { %310 = vmatpush3.bf16.msra.mxu0 %v307_v3  ;;  %v319_v13 = vpack.c.bf16 %v165_v12, %v164_v11  ;;  %p396_p10 = scmp.ne.s32.totalorder %s256_s29, %s395_s2  ;;  %p401_p12 = scmp.lt.s32.totalorder %s395_s2, %s395_s2 }
  0x3b   :  { %312 = vmatprep.subr.bf16.mxu0 %v311_v6  ;;  %316 = vmatprep.subr.bf16.mxu1 %v315_v10 }
  0x3c   :  { %318 = vmatpush3.bf16.msra.mxu1 %v315_v10  ;;  %p402_p13 = por %p401_p12, %p400_p11 }
  0x3d   :  { %320 = vmatprep.subr.bf16.mxu1 %v319_v13 }
  0x3e   :  { %314 = vmatpush3.bf16.msra.mxu0 %v311_v6  ;;  %p403_p0 = pnand %p402_p13, %p396_p10 }
  0x40   :  { %322 = vmatpush3.bf16.msra.mxu1 %v319_v13 }
  0x41   :  { %294 = vmatmul.mubr.msk.f32.vlgmr.msra.gmra.mrb[0].mxu0 %vm76_vm0, %v64_v7 }
 0x114   :  { %v295_v15 = vpop.f32.mrb[0].mxu0 }
 0x115   :  { %v155_v16 = vadd.f32 %v295_v15, %v268_v14  ;;  %v149_v17 = vpop.f32.mrb[1].mxu0 }
 0x116   :  { %v150_v18 = vadd.f32 %v268_v14, %v149_v17 }
 0x117   :  { %159 = vst.msk [vmem:[#allocation2 + $0x8] sm:$0xff] %vm76_vm0, %v155_v16 }
 0x118   :  { %158 = vst.msk [vmem:[#allocation2] sm:$0xff] %vm76_vm0, %v150_v18 }
 0x11e   :  { %v161_v20 = vld [vmem:[#allocation2 + $0x8] sm:$0xff] }
 0x11f   :  { %v160_v19 = vld [vmem:[#allocation2] sm:$0xff] }
 0x120   :  { %304 = vmatprep.mubr.msk.f32.mxu1 %vm76_vm0, %v160_v19 }
 0x121   :  { %305 = vmatmul.mubr.msk.f32.vlgmr.msra.gmra.mrb[0].mxu1 %vm76_vm0, %v161_v20 }
 0x1f4   :  { %v306_v21 = vpop.f32.mrb[0].mxu1 }
 0x1f5   :  { %249 = vst [vmem:[#allocation9 + $0x8] sm:$0xff] %v306_v21  ;;  %v239_v22 = vpop.f32.mrb[1].mxu1 }
 0x1f6   :  { %248 = vst [vmem:[#allocation9] sm:$0xff] %v239_v22 }
 0x1f7   :  { %406 = shalt.err (!%p403_p0)
}
 0x1f8   :  { %s407_s6 = scalar_lea.hbm %s534_s4, 256 }
 0x1f9   :  { %p408_p1 = scmp.ne.s32.totalorder %s534_s4, %s407_s6  ;;  %p411_p2 = scmp.lt.u32.totalorder %s407_s6, %s534_s4 }
 0x1fb   :  { %p413_p3 = pnand %p411_p2, %p408_p1 }
 0x1fd   :  { %416 = shalt.err (!%p413_p3)
}
 0x1fe   :  { %261 = dma.vmem_to_hbm [thread:$0]  %s256_s29, 256, %s534_s4, [#allocation5], %s425_s27, %s425_s27, %s426_s28  }
 0x1ff   :  { %421 = dma.done.wait [#allocation5], 256  }
 0x200   :  { %422 = vsyncadd [#allocation5], 4294967040 }
 0x201   :  { %265 = vsyncpa [#allocation4], 1 }
 0x202   :  { %266 = vsyncpa [#allocation7], 1 }
 0x203   :  { %267 = vsyncpa [#allocation5], 1 }

</bundles_post_ra>
